<compile_context>
chip_gen: v7x
topology: tpu7x:2x2x1
jax: 0.10.0
libtpu: 0.0.40
codegen_flags: <defaults>
</compile_context>

<pallas_src>
import functools
from math import sqrt

import jax
import jax.numpy as jnp
from jax import lax
from jax.experimental import pallas as pl
from jax.experimental.pallas import tpu as pltpu


def _round_up(x, m):
    return ((x + m - 1) // m) * m


def _default_block_cols():
    try:
        kind = jax.devices()[0].device_kind.lower()
    except Exception:
        return 512
    if "v5" in kind or "v6" in kind:
        return 1024   # 128 MiB VMEM parts: larger tiles amortize per-step overhead
    return 512        # v7x (64 MiB VMEM) and unknown parts: stay conservative


def _equal_conv2d_kernel(x_hbm, w_ref, b_ref, o_ref, buf, sem, *, kh, kw, wp):
    # x_hbm: (N, C_in, L)        padded+flattened input, left in HBM (pl.ANY)
    # w_ref: (taps, C_out, C_in) equal-lr-scaled weights, tap-major
    # b_ref: (C_out, 1)          bias (f32)
    # o_ref: (C_out, TB)         lane-dense output tile
    # buf:   (2, C_in, WIN)      manual double-buffered input window (VMEM)
    # sem:   (2,) DMA semaphores, one per buffer slot
    r = pl.program_id(0)                 # spatial tile  (parallel axis)
    nn = pl.program_id(1)                # batch element (arbitrary axis, sequential)
    n_batch = pl.num_programs(1)
    tb = o_ref.shape[-1]
    win = buf.shape[-1]
    slot = lax.rem(nn, 2)
    start = pl.multiple_of(r * tb, 128)  # tb is a multiple of 128

    def fetch(batch_idx, s):
        pltpu.make_async_copy(
            x_hbm.at[batch_idx, :, pl.ds(start, win)],
            buf.at[s], sem.at[s]).start()

    # Prime the pipeline at the start of each spatial tile's batch sweep.
    @pl.when(nn == 0)
    def _():
        fetch(0, 0)

    # Wait for this step's window.
    pltpu.make_async_copy(
        x_hbm.at[0, :, pl.ds(0, win)], buf.at[slot], sem.at[slot]).wait()

    # Prefetch the next batch element's window into the other slot while we
    # compute on this one.  The guard keeps prefetches inside one spatial tile
    # so no DMA is left outstanding at a tile / core-chunk boundary.
    @pl.when(nn + 1 < n_batch)
    def _():
        fetch(nn + 1, 1 - slot)

    # Direct tap accumulation on the MXU (no im2col materialization): tap
    # (ky, kx) of output flat position b is the statically shifted slice at
    # flat index b + ky*Wp + kx of the padded image.
    acc = None
    for ky in range(kh):
        for kx in range(kw):
            t = ky * kw + kx
            off = ky * wp + kx                        # static flat tap offset
            x_t = buf[slot, :, pl.ds(off, tb)]        # (C_in, TB)
            part = jnp.dot(w_ref[t], x_t, preferred_element_type=jnp.float32)
            acc = part if acc is None else acc + part

    # f32 epilogue: bias add (scale already folded into the weights).
    o_ref[...] = (acc + b_ref[...]).astype(o_ref.dtype)


def equal_conv2d(x, weight, bias, *, padding=1, block_cols=None,
                 compute_dtype=None):
    """x: (N, C_in, H, W) NCHW. weight: (C_out, C_in, KH, KW). bias: (C_out,)."""
    n, c_in, h, w = x.shape
    c_out, c_in_w, kh, kw = weight.shape
    assert c_in_w == c_in
    orig_dtype = x.dtype

    fan_in = c_in * kh * kw
    scale = sqrt(2.0 / fan_in)
    taps = kh * kw

    hp, wp = h + 2 * padding, w + 2 * padding
    h_out = hp - kh + 1
    w_out = wp - kw + 1

    # Fold the equal-lr scale into the (tiny) weight; tap-major layout so the
    # kernel indexes each tap's (C_out, C_in) block on the leading axis.
    w3 = (weight * scale).transpose(2, 3, 0, 1).reshape(taps, c_out, c_in)
    b2d = bias.reshape(c_out, 1).astype(jnp.float32)

    if compute_dtype is not None:          # e.g. jnp.bfloat16 on v6e/v7x
        x = x.astype(compute_dtype)
        w3 = w3.astype(compute_dtype)

    # Lane-dense spatial tiling of the flattened padded image.
    if block_cols is None:
        block_cols = _default_block_cols()
    block_cols = max(128, _round_up(block_cols, 128))
    b_valid = h_out * wp                          # flat positions actually needed
    tb = min(block_cols, _round_up(b_valid, 128))
    num_b_tiles = pl.cdiv(b_valid, tb)
    b_total = num_b_tiles * tb

    halo = (kh - 1) * wp + (kw - 1)               # largest static tap offset
    halo_pad = _round_up(max(halo, 1), 128)       # keep window width 128-aligned
    win = tb + halo_pad

    # Single merged pad: conv spatial padding + enough extra zero rows that
    # every tile's (TB + halo_pad) window stays in bounds after flattening.
    need_flat = b_total + halo_pad
    extra_rows = max(0, -(-(need_flat - hp * wp) // wp))
    xp = jnp.pad(x, ((0, 0), (0, 0),
                     (padding, padding + extra_rows),
                     (padding, padding)))
    l_flat = (hp + extra_rows) * wp
    xpf = xp.reshape(n, c_in, l_flat)

    kernel = functools.partial(_equal_conv2d_kernel, kh=kh, kw=kw, wp=wp)

    itemsize = jnp.dtype(xpf.dtype).itemsize
    out_itemsize = jnp.dtype(orig_dtype).itemsize
    flops = 2 * n * c_out * taps * c_in * b_total
    bytes_accessed = (n * c_in * l_flat * itemsize
                      + taps * c_out * c_in * itemsize
                      + c_out * 4
                      + n * c_out * b_total * out_itemsize)
    # VMEM actually used per core: manual 2x input window, (double-buffered)
    # weight + bias + output blocks, f32 accumulator headroom. Cap at 40 MiB
    # so large configs still fit v7x's 64 MiB physical VMEM.
    vmem_need = (2 * c_in * win * itemsize
                 + 2 * taps * c_out * c_in * itemsize
                 + 2 * c_out * 4
                 + 2 * c_out * tb * out_itemsize
                 + c_out * tb * 4)
    vmem_limit = int(min(max(2 * vmem_need, 16 * 2**20), 40 * 2**20))

    y = pl.pallas_call(
        kernel,
        out_shape=jax.ShapeDtypeStruct((n, c_out, b_total), orig_dtype),
        grid_spec=pltpu.PrefetchScalarGridSpec(
            num_scalar_prefetch=0,
            grid=(num_b_tiles, n),   # spatial tiles lead: parallel units even for N==1
            in_specs=[
                pl.BlockSpec(memory_space=pl.ANY),            # input stays in HBM
                pl.BlockSpec((taps, c_out, c_in), lambda r, nn: (0, 0, 0)),
                pl.BlockSpec((c_out, 1), lambda r, nn: (0, 0)),
            ],
            out_specs=pl.BlockSpec((pl.Squeezed(), c_out, tb),
                                   lambda r, nn: (nn, 0, r)),
            scratch_shapes=[
                pltpu.VMEM((2, c_in, win), xpf.dtype),
                pltpu.SemaphoreType.DMA((2,)),
            ],
        ),
        compiler_params=pltpu.CompilerParams(
            dimension_semantics=("parallel", "arbitrary"),
            vmem_limit_bytes=vmem_limit),
        cost_estimate=pl.CostEstimate(flops=flops, transcendentals=0,
                                      bytes_accessed=bytes_accessed),
    )(xpf, w3, b2d)

    # Crop: valid outputs live at flat positions oh*Wp + ow with ow < W_out.
    out = y[:, :, :h_out * wp].reshape(n, c_out, h_out, wp)[:, :, :, :w_out]
    return out.astype(orig_dtype)


if __name__ == "__main__":
    # EqualConv2d(in_channels=4, out_channels=8, kernel_size=3, padding=1)
    N, C_IN, H, W = 2, 4, 16, 16
    C_OUT, KH, KW, PAD = 8, 3, 3, 1

    key = jax.random.PRNGKey(0)
    kx_, kw_ = jax.random.split(key)
    x = jax.random.normal(kx_, (N, C_IN, H, W), dtype=jnp.float32)
    weight = jax.random.normal(kw_, (C_OUT, C_IN, KH, KW), dtype=jnp.float32)  # .normal_()
    bias = jnp.zeros((C_OUT,), dtype=jnp.float32)                              # .zero_()

    out = equal_conv2d(x, weight, bias, padding=PAD)
    out = jax.block_until_ready(out)

    # Reference: scaled conv via lax.conv_general_dilated.
    scale = sqrt(2.0 / (C_IN * KH * KW))
    ref = lax.conv_general_dilated(
        x, weight * scale,
        window_strides=(1, 1),
        padding=((PAD, PAD), (PAD, PAD)),
        dimension_numbers=("NCHW", "OIHW", "NCHW"),
    ) + bias.reshape(1, C_OUT, 1, 1)

    assert out.shape == (N, C_OUT, H, W)
    assert jnp.allclose(out, ref, atol=1e-4, rtol=1e-4)
    print("KERNEL_OK")
</pallas_src>

<mosaic_0001>
module attributes {stable_mosaic.version = 11 : i64} {
  func.func @_equal_conv2d_kernel(%arg0: i32, %arg1: i32, %arg2: memref<2x4x522xf32, #tpu.memory_space<any>>, %arg3: memref<9x8x4xf32, #tpu.memory_space<vmem>>, %arg4: memref<8x1xf32, #tpu.memory_space<vmem>>, %arg5: memref<1x8x384xf32, #tpu.memory_space<vmem>>, %arg6: memref<2x4x512xf32, #tpu.memory_space<vmem>>, %arg7: memref<2x!tpu.dma_semaphore, #tpu.memory_space<semaphore_mem>>) attributes {dimension_semantics = [#tpu.dimension_semantics<parallel>, #tpu.dimension_semantics<arbitrary>], iteration_bounds = array<i64: 1, 2>, scalar_prefetch = 0 : i64, scratch_operands = 2 : i64, tpu.core_type = #tpu.core_type<tc>, window_params = [{}, {pipeline_mode = #tpu.pipeline_mode<synchronous>, transform_indices = @transform_1, window_bounds = array<i64: 9, 8, 4>}, {pipeline_mode = #tpu.pipeline_mode<synchronous>, transform_indices = @transform_2, window_bounds = array<i64: 8, 1>}, {transform_indices = @transform_3, window_bounds = array<i64: 1, 8, 384>}]} {
    %c2_i32 = arith.constant 2 : i32
    %0 = arith.remsi %arg1, %c2_i32 : i32
    %c384_i32 = arith.constant 384 : i32
    %1 = arith.muli %arg0, %c384_i32 : i32
    %2 = tpu.assume_multiple %1, 128 : i32
    %c0_i32 = arith.constant 0 : i32
    %3 = arith.cmpi eq, %arg1, %c0_i32 : i32
    %4 = arith.extui %3 : i1 to i32
    %c0_i32_0 = arith.constant 0 : i32
    %5 = arith.cmpi ne, %4, %c0_i32_0 : i32
    scf.if %5 {
      %c0_i32_51 = arith.constant 0 : i32
      %c0_i32_52 = arith.constant 0 : i32
      %c0_i32_53 = arith.constant 0 : i32
      %c0_i32_54 = arith.constant 0 : i32
      %84 = tpu.memref_slice %arg2[%c0_i32_51, %c0_i32_54, %2] : memref<2x4x522xf32, #tpu.memory_space<any>> -> memref<1x4x512xf32, #tpu.memory_space<any>>
      %85 = tpu.memref_squeeze %84 : memref<1x4x512xf32, #tpu.memory_space<any>> -> memref<4x512xf32, #tpu.memory_space<any>>
      %c0_i32_55 = arith.constant 0 : i32
      %c0_i32_56 = arith.constant 0 : i32
      %86 = tpu.memref_slice %arg6[%c0_i32_52, %c0_i32_55, %c0_i32_56] : memref<2x4x512xf32, #tpu.memory_space<vmem>> -> memref<1x4x512xf32, #tpu.memory_space<vmem>>
      %87 = tpu.memref_squeeze %86 : memref<1x4x512xf32, #tpu.memory_space<vmem>> -> memref<4x512xf32, #tpu.memory_space<vmem>>
      %88 = tpu.memref_slice %arg7[%c0_i32_53] : memref<2x!tpu.dma_semaphore, #tpu.memory_space<semaphore_mem>> -> memref<1x!tpu.dma_semaphore, #tpu.memory_space<semaphore_mem>>
      %89 = tpu.memref_squeeze %88 : memref<1x!tpu.dma_semaphore, #tpu.memory_space<semaphore_mem>> -> memref<!tpu.dma_semaphore, #tpu.memory_space<semaphore_mem>>
      tpu.enqueue_dma source(%85 : memref<4x512xf32, #tpu.memory_space<any>>) target(%87 : memref<4x512xf32, #tpu.memory_space<vmem>>) target_semaphore(%89 : memref<!tpu.dma_semaphore, #tpu.memory_space<semaphore_mem>>)
    } else {
    }
    %c0_i32_1 = arith.constant 0 : i32
    %c0_i32_2 = arith.constant 0 : i32
    %c0_i32_3 = arith.constant 0 : i32
    %6 = tpu.memref_slice %arg2[%c0_i32_1, %c0_i32_2, %c0_i32_3] : memref<2x4x522xf32, #tpu.memory_space<any>> -> memref<1x4x512xf32, #tpu.memory_space<any>>
    %7 = tpu.memref_squeeze %6 : memref<1x4x512xf32, #tpu.memory_space<any>> -> memref<4x512xf32, #tpu.memory_space<any>>
    %c0_i32_4 = arith.constant 0 : i32
    %c0_i32_5 = arith.constant 0 : i32
    %8 = tpu.memref_slice %arg6[%0, %c0_i32_4, %c0_i32_5] : memref<2x4x512xf32, #tpu.memory_space<vmem>> -> memref<1x4x512xf32, #tpu.memory_space<vmem>>
    %9 = tpu.memref_squeeze %8 : memref<1x4x512xf32, #tpu.memory_space<vmem>> -> memref<4x512xf32, #tpu.memory_space<vmem>>
    %10 = tpu.memref_slice %arg7[%0] : memref<2x!tpu.dma_semaphore, #tpu.memory_space<semaphore_mem>> -> memref<1x!tpu.dma_semaphore, #tpu.memory_space<semaphore_mem>>
    %11 = tpu.memref_squeeze %10 : memref<1x!tpu.dma_semaphore, #tpu.memory_space<semaphore_mem>> -> memref<!tpu.dma_semaphore, #tpu.memory_space<semaphore_mem>>
    tpu.wait_dma2 semaphore(%11 : memref<!tpu.dma_semaphore, #tpu.memory_space<semaphore_mem>>) src(%7 : memref<4x512xf32, #tpu.memory_space<any>>) dst(%9 : memref<4x512xf32, #tpu.memory_space<vmem>>)
    %c1_i32 = arith.constant 1 : i32
    %12 = arith.addi %arg1, %c1_i32 : i32
    %c2_i32_6 = arith.constant 2 : i32
    %13 = arith.cmpi slt, %12, %c2_i32_6 : i32
    %14 = arith.extui %13 : i1 to i32
    %c0_i32_7 = arith.constant 0 : i32
    %15 = arith.cmpi ne, %14, %c0_i32_7 : i32
    scf.if %15 {
      %c1_i32_51 = arith.constant 1 : i32
      %84 = arith.addi %arg1, %c1_i32_51 : i32
      %c1_i32_52 = arith.constant 1 : i32
      %85 = arith.subi %c1_i32_52, %0 : i32
      %c0_i32_53 = arith.constant 0 : i32
      %86 = tpu.memref_slice %arg2[%84, %c0_i32_53, %2] : memref<2x4x522xf32, #tpu.memory_space<any>> -> memref<1x4x512xf32, #tpu.memory_space<any>>
      %87 = tpu.memref_squeeze %86 : memref<1x4x512xf32, #tpu.memory_space<any>> -> memref<4x512xf32, #tpu.memory_space<any>>
      %c0_i32_54 = arith.constant 0 : i32
      %c0_i32_55 = arith.constant 0 : i32
      %88 = tpu.memref_slice %arg6[%85, %c0_i32_54, %c0_i32_55] : memref<2x4x512xf32, #tpu.memory_space<vmem>> -> memref<1x4x512xf32, #tpu.memory_space<vmem>>
      %89 = tpu.memref_squeeze %88 : memref<1x4x512xf32, #tpu.memory_space<vmem>> -> memref<4x512xf32, #tpu.memory_space<vmem>>
      %90 = tpu.memref_slice %arg7[%85] : memref<2x!tpu.dma_semaphore, #tpu.memory_space<semaphore_mem>> -> memref<1x!tpu.dma_semaphore, #tpu.memory_space<semaphore_mem>>
      %91 = tpu.memref_squeeze %90 : memref<1x!tpu.dma_semaphore, #tpu.memory_space<semaphore_mem>> -> memref<!tpu.dma_semaphore, #tpu.memory_space<semaphore_mem>>
      tpu.enqueue_dma source(%87 : memref<4x512xf32, #tpu.memory_space<any>>) target(%89 : memref<4x512xf32, #tpu.memory_space<vmem>>) target_semaphore(%91 : memref<!tpu.dma_semaphore, #tpu.memory_space<semaphore_mem>>)
    } else {
    }
    %16 = arith.index_cast %0 : i32 to index
    %c0 = arith.constant 0 : index
    %c0_8 = arith.constant 0 : index
    %17 = vector.load %arg6[%16, %c0, %c0_8] : memref<2x4x512xf32, #tpu.memory_space<vmem>>, vector<1x4x384xf32>
    %18 = vector.shape_cast %17 : vector<1x4x384xf32> to vector<4x384xf32>
    %c0_9 = arith.constant 0 : index
    %c0_10 = arith.constant 0 : index
    %c0_11 = arith.constant 0 : index
    %19 = vector.load %arg3[%c0_9, %c0_10, %c0_11] : memref<9x8x4xf32, #tpu.memory_space<vmem>>, vector<1x8x4xf32>
    %20 = vector.shape_cast %19 : vector<1x8x4xf32> to vector<8x4xf32>
    %cst = arith.constant dense<0.000000e+00> : vector<8x384xf32>
    %21 = tpu.matmul %20, %18, %cst {dimension_numbers = #tpu.dot_dimension_numbers<[1], [0], [0], [1], [0, 0, 1, 1], [], []>} : vector<8x4xf32>, vector<4x384xf32>, vector<8x384xf32> -> vector<8x384xf32>
    %22 = arith.index_cast %0 : i32 to index
    %c0_12 = arith.constant 0 : index
    %c1 = arith.constant 1 : index
    %23 = vector.load %arg6[%22, %c0_12, %c1] : memref<2x4x512xf32, #tpu.memory_space<vmem>>, vector<1x4x384xf32>
    %24 = vector.shape_cast %23 : vector<1x4x384xf32> to vector<4x384xf32>
    %c1_13 = arith.constant 1 : index
    %c0_14 = arith.constant 0 : index
    %c0_15 = arith.constant 0 : index
    %25 = vector.load %arg3[%c1_13, %c0_14, %c0_15] : memref<9x8x4xf32, #tpu.memory_space<vmem>>, vector<1x8x4xf32>
    %26 = vector.shape_cast %25 : vector<1x8x4xf32> to vector<8x4xf32>
    %cst_16 = arith.constant dense<0.000000e+00> : vector<8x384xf32>
    %27 = tpu.matmul %26, %24, %cst_16 {dimension_numbers = #tpu.dot_dimension_numbers<[1], [0], [0], [1], [0, 0, 1, 1], [], []>} : vector<8x4xf32>, vector<4x384xf32>, vector<8x384xf32> -> vector<8x384xf32>
    %28 = arith.addf %21, %27 : vector<8x384xf32>
    %29 = arith.index_cast %0 : i32 to index
    %c0_17 = arith.constant 0 : index
    %c2 = arith.constant 2 : index
    %30 = vector.load %arg6[%29, %c0_17, %c2] : memref<2x4x512xf32, #tpu.memory_space<vmem>>, vector<1x4x384xf32>
    %31 = vector.shape_cast %30 : vector<1x4x384xf32> to vector<4x384xf32>
    %c2_18 = arith.constant 2 : index
    %c0_19 = arith.constant 0 : index
    %c0_20 = arith.constant 0 : index
    %32 = vector.load %arg3[%c2_18, %c0_19, %c0_20] : memref<9x8x4xf32, #tpu.memory_space<vmem>>, vector<1x8x4xf32>
    %33 = vector.shape_cast %32 : vector<1x8x4xf32> to vector<8x4xf32>
    %cst_21 = arith.constant dense<0.000000e+00> : vector<8x384xf32>
    %34 = tpu.matmul %33, %31, %cst_21 {dimension_numbers = #tpu.dot_dimension_numbers<[1], [0], [0], [1], [0, 0, 1, 1], [], []>} : vector<8x4xf32>, vector<4x384xf32>, vector<8x384xf32> -> vector<8x384xf32>
    %35 = arith.addf %28, %34 : vector<8x384xf32>
    %36 = arith.index_cast %0 : i32 to index
    %c0_22 = arith.constant 0 : index
    %c18 = arith.constant 18 : index
    %37 = vector.load %arg6[%36, %c0_22, %c18] : memref<2x4x512xf32, #tpu.memory_space<vmem>>, vector<1x4x384xf32>
    %38 = vector.shape_cast %37 : vector<1x4x384xf32> to vector<4x384xf32>
    %c3 = arith.constant 3 : index
    %c0_23 = arith.constant 0 : index
    %c0_24 = arith.constant 0 : index
    %39 = vector.load %arg3[%c3, %c0_23, %c0_24] : memref<9x8x4xf32, #tpu.memory_space<vmem>>, vector<1x8x4xf32>
    %40 = vector.shape_cast %39 : vector<1x8x4xf32> to vector<8x4xf32>
    %cst_25 = arith.constant dense<0.000000e+00> : vector<8x384xf32>
    %41 = tpu.matmul %40, %38, %cst_25 {dimension_numbers = #tpu.dot_dimension_numbers<[1], [0], [0], [1], [0, 0, 1, 1], [], []>} : vector<8x4xf32>, vector<4x384xf32>, vector<8x384xf32> -> vector<8x384xf32>
    %42 = arith.addf %35, %41 : vector<8x384xf32>
    %43 = arith.index_cast %0 : i32 to index
    %c0_26 = arith.constant 0 : index
    %c19 = arith.constant 19 : index
    %44 = vector.load %arg6[%43, %c0_26, %c19] : memref<2x4x512xf32, #tpu.memory_space<vmem>>, vector<1x4x384xf32>
    %45 = vector.shape_cast %44 : vector<1x4x384xf32> to vector<4x384xf32>
    %c4 = arith.constant 4 : index
    %c0_27 = arith.constant 0 : index
    %c0_28 = arith.constant 0 : index
    %46 = vector.load %arg3[%c4, %c0_27, %c0_28] : memref<9x8x4xf32, #tpu.memory_space<vmem>>, vector<1x8x4xf32>
    %47 = vector.shape_cast %46 : vector<1x8x4xf32> to vector<8x4xf32>
    %cst_29 = arith.constant dense<0.000000e+00> : vector<8x384xf32>
    %48 = tpu.matmul %47, %45, %cst_29 {dimension_numbers = #tpu.dot_dimension_numbers<[1], [0], [0], [1], [0, 0, 1, 1], [], []>} : vector<8x4xf32>, vector<4x384xf32>, vector<8x384xf32> -> vector<8x384xf32>
    %49 = arith.addf %42, %48 : vector<8x384xf32>
    %50 = arith.index_cast %0 : i32 to index
    %c0_30 = arith.constant 0 : index
    %c20 = arith.constant 20 : index
    %51 = vector.load %arg6[%50, %c0_30, %c20] : memref<2x4x512xf32, #tpu.memory_space<vmem>>, vector<1x4x384xf32>
    %52 = vector.shape_cast %51 : vector<1x4x384xf32> to vector<4x384xf32>
    %c5 = arith.constant 5 : index
    %c0_31 = arith.constant 0 : index
    %c0_32 = arith.constant 0 : index
    %53 = vector.load %arg3[%c5, %c0_31, %c0_32] : memref<9x8x4xf32, #tpu.memory_space<vmem>>, vector<1x8x4xf32>
    %54 = vector.shape_cast %53 : vector<1x8x4xf32> to vector<8x4xf32>
    %cst_33 = arith.constant dense<0.000000e+00> : vector<8x384xf32>
    %55 = tpu.matmul %54, %52, %cst_33 {dimension_numbers = #tpu.dot_dimension_numbers<[1], [0], [0], [1], [0, 0, 1, 1], [], []>} : vector<8x4xf32>, vector<4x384xf32>, vector<8x384xf32> -> vector<8x384xf32>
    %56 = arith.addf %49, %55 : vector<8x384xf32>
    %57 = arith.index_cast %0 : i32 to index
    %c0_34 = arith.constant 0 : index
    %c36 = arith.constant 36 : index
    %58 = vector.load %arg6[%57, %c0_34, %c36] : memref<2x4x512xf32, #tpu.memory_space<vmem>>, vector<1x4x384xf32>
    %59 = vector.shape_cast %58 : vector<1x4x384xf32> to vector<4x384xf32>
    %c6 = arith.constant 6 : index
    %c0_35 = arith.constant 0 : index
    %c0_36 = arith.constant 0 : index
    %60 = vector.load %arg3[%c6, %c0_35, %c0_36] : memref<9x8x4xf32, #tpu.memory_space<vmem>>, vector<1x8x4xf32>
    %61 = vector.shape_cast %60 : vector<1x8x4xf32> to vector<8x4xf32>
    %cst_37 = arith.constant dense<0.000000e+00> : vector<8x384xf32>
    %62 = tpu.matmul %61, %59, %cst_37 {dimension_numbers = #tpu.dot_dimension_numbers<[1], [0], [0], [1], [0, 0, 1, 1], [], []>} : vector<8x4xf32>, vector<4x384xf32>, vector<8x384xf32> -> vector<8x384xf32>
    %63 = arith.addf %56, %62 : vector<8x384xf32>
    %64 = arith.index_cast %0 : i32 to index
    %c0_38 = arith.constant 0 : index
    %c37 = arith.constant 37 : index
    %65 = vector.load %arg6[%64, %c0_38, %c37] : memref<2x4x512xf32, #tpu.memory_space<vmem>>, vector<1x4x384xf32>
    %66 = vector.shape_cast %65 : vector<1x4x384xf32> to vector<4x384xf32>
    %c7 = arith.constant 7 : index
    %c0_39 = arith.constant 0 : index
    %c0_40 = arith.constant 0 : index
    %67 = vector.load %arg3[%c7, %c0_39, %c0_40] : memref<9x8x4xf32, #tpu.memory_space<vmem>>, vector<1x8x4xf32>
    %68 = vector.shape_cast %67 : vector<1x8x4xf32> to vector<8x4xf32>
    %cst_41 = arith.constant dense<0.000000e+00> : vector<8x384xf32>
    %69 = tpu.matmul %68, %66, %cst_41 {dimension_numbers = #tpu.dot_dimension_numbers<[1], [0], [0], [1], [0, 0, 1, 1], [], []>} : vector<8x4xf32>, vector<4x384xf32>, vector<8x384xf32> -> vector<8x384xf32>
    %70 = arith.addf %63, %69 : vector<8x384xf32>
    %71 = arith.index_cast %0 : i32 to index
    %c0_42 = arith.constant 0 : index
    %c38 = arith.constant 38 : index
    %72 = vector.load %arg6[%71, %c0_42, %c38] : memref<2x4x512xf32, #tpu.memory_space<vmem>>, vector<1x4x384xf32>
    %73 = vector.shape_cast %72 : vector<1x4x384xf32> to vector<4x384xf32>
    %c8 = arith.constant 8 : index
    %c0_43 = arith.constant 0 : index
    %c0_44 = arith.constant 0 : index
    %74 = vector.load %arg3[%c8, %c0_43, %c0_44] : memref<9x8x4xf32, #tpu.memory_space<vmem>>, vector<1x8x4xf32>
    %75 = vector.shape_cast %74 : vector<1x8x4xf32> to vector<8x4xf32>
    %cst_45 = arith.constant dense<0.000000e+00> : vector<8x384xf32>
    %76 = tpu.matmul %75, %73, %cst_45 {dimension_numbers = #tpu.dot_dimension_numbers<[1], [0], [0], [1], [0, 0, 1, 1], [], []>} : vector<8x4xf32>, vector<4x384xf32>, vector<8x384xf32> -> vector<8x384xf32>
    %77 = arith.addf %70, %76 : vector<8x384xf32>
    %c0_46 = arith.constant 0 : index
    %c0_47 = arith.constant 0 : index
    %78 = vector.load %arg4[%c0_46, %c0_47] : memref<8x1xf32, #tpu.memory_space<vmem>>, vector<8x1xf32>
    %79 = vector.broadcast %78 : vector<8x1xf32> to vector<8x384xf32>
    %80 = arith.addf %77, %79 : vector<8x384xf32>
    %c0_48 = arith.constant 0 : index
    %c0_49 = arith.constant 0 : index
    %c0_50 = arith.constant 0 : index
    %81 = vector.load %arg5[%c0_48, %c0_49, %c0_50] : memref<1x8x384xf32, #tpu.memory_space<vmem>>, vector<1x8x384xf32>
    %82 = vector.shape_cast %81 : vector<1x8x384xf32> to vector<8x384xf32>
    %83 = vector.shape_cast %80 : vector<8x384xf32> to vector<1x8x384xf32>
    tpu.vector_store %arg5[%c0_48, %c0_49, %c0_50], %83 {strides = array<i32>} : memref<1x8x384xf32, #tpu.memory_space<vmem>>, vector<1x8x384xf32>,
    return
  }
  func.func @transform_1(%arg0: i32, %arg1: i32) -> (i32, i32, i32) {
    %c0_i32 = arith.constant 0 : i32
    %c0_i32_0 = arith.constant 0 : i32
    %c0_i32_1 = arith.constant 0 : i32
    %c0_i32_2 = arith.constant 0 : i32
    return %c0_i32, %c0_i32_0, %c0_i32_1 : i32, i32, i32
  }
  func.func @transform_2(%arg0: i32, %arg1: i32) -> (i32, i32) {
    %c0_i32 = arith.constant 0 : i32
    %c0_i32_0 = arith.constant 0 : i32
    %c0_i32_1 = arith.constant 0 : i32
    return %c0_i32, %c0_i32_0 : i32, i32
  }
  func.func @transform_3(%arg0: i32, %arg1: i32) -> (i32, i32, i32) {
    %c0_i32 = arith.constant 0 : i32
    %c0_i32_0 = arith.constant 0 : i32
    return %arg1, %c0_i32, %arg0 : i32, i32, i32
  }
}

</mosaic_0001>

<bundles_post_ra>
// kernel: tpu_custom_call.1
= control target key start
LH: loop header
LB: loop body
LE: loop exit
PB: predicated region body
PF: predicated region fallthrough
CT: control target
= control target key end

     0   :  { %8 = vsyncpa [#allocation5], 0  ;;  %s2562_s0 = inlined_call_operand.vmem [shape: f32[2,4,522], index: 0, kind: input, shape index: {}]   ;;  %s2563_s1 = inlined_call_operand.vmem [shape: f32[9,8,4], index: 1, kind: input, shape index: {}]   ;;  %s2564_s2 = inlined_call_operand.vmem [shape: f32[8,1], index: 2, kind: input, shape index: {}]   ;;  %s2565_s3 = inlined_call_operand.hbm [shape: f32[2,8,384], index: 3, kind: output, shape index: {}]  }
   0x1   :  { %10 = vsyncpa [#allocation5 + $0x1], 0  ;;  %s2269_s12 = smov 0   ;;  %s2271_s13 = smov 0  }
   0x2   :  { %s2273_s14 = smov 0   ;;  %s2275_s15 = smov 0  }
   0x3   :  { %s2277_s16 = smov 0   ;;  %s2279_s17 = smov 0  }
   0x4 LB: > { %s1930_s18 = sadd.s32 4294967295, %s2235_s17   ;;  %s1931_s19 = sadd.s32 4294967294, %s2235_s17   ;;  %s2235_s17 = sphi %s2279_s17, %s16_s17   ;;  %s2231_s16 = sphi %s2277_s16, %s2572_s16   ;;  %s2227_s15 = sphi %s2275_s15, %s2571_s15   ;;  %s2223_s14 = sphi %s2273_s14, %s2570_s14   ;;  %s2219_s13 = sphi %s2271_s13, %s2569_s13   ;;  %s2215_s12 = sphi %s2269_s12, %s2568_s12  }
   0x5   : > { %s25_s20 = sadd.s32 1, %s2231_s16  ;;  %s79_s21 = sadd.s32 1, %s2223_s14 }
   0x6   : > { %p26_p0 = scmp.ge.s32.totalorder %s25_s20, 2  ;;  %p89_p1 = scmp.ne.s32.totalorder %s2223_s14, %s2219_s13 }
   0x7   : > { %p90_p2 = scmp.eq.s32.totalorder %s1930_s18, 1  ;;  %p95_p3 = scmp.ne.s32.totalorder %s2219_s13, %s2215_s12 }
   0x8   : > { %s2574_s20 = smov (%p26_p0, %s25_s20), 0  ;;  %p96_p5 = scmp.eq.s32.totalorder %s1931_s19, 1 }
   0x9   : > { %p2309_p4 = por %p90_p2, %p89_p1  ;;  %s74_s23 = ssub.s32 %s2231_s16, %s2574_s20 }
   0xa   : > { %p1933_p6 = scmp.ge.s32.totalorder %s2235_s17, 1  ;;  %p77_p7 = scmp.eq.s32.totalorder %s74_s23, 0 }
   0xb   : > { %p2316_p8 = por %p96_p5, %p95_p3  ;;  %p120_p9 = scmp.lt.s32.totalorder %s2235_s17, 3 }
   0xc   : > { %s2322_s25 = scalar_select %p77_p7, %s2223_s14, %s79_s21  }
   0xd   : > { %p121_p10 = pnand %p1933_p6, %p120_p9 }
   0xe   : > { %s134_s26 = sand.u32 (!%p121_p10), 1, %s2219_s13   ;;  %p138_p11 = scmp.lt.s32.totalorder (!%p121_p10), %s2227_s15, 0 }
   0xf   : > { %124 = sbr.rel (%p121_p10) target bundleno = 465 (0x1d1), region = 28  ;;  %s139_s28 = ssub.s32 (!%p121_p10), 0, %s2227_s15 }
  0x10   : > { %s2084_s27 = smul.u32 (!%p121_p10), 24, %s134_s26  ;;  %s1934_s29 = smin.u32 (!%p121_p10), %s2227_s15, %s139_s28 }
  0x11   : > { %s141_s30 = sand.u32 (!%p121_p10), 1, %s1934_s29   ;;  %p1935_p12 = scmp.ne.s32.totalorder (!%p121_p10), %s2227_s15, 0 }
  0x12   : > { %s142_s4 = ssub.s32 (!%p121_p10), 0, %s141_s30  ;;  %s2330_s5 = scalar_lea.vmem (!%p121_p10), [#allocation4], %s2084_s27 }
  0x16   : > { %s2576_s4 = smov (!%p138_p11, %s142_s4), %s141_s30  ;;  %148 = sbr.rel (%p1935_p12) target bundleno = 30 (0x1e), region = 32 }
  0x17   : > { %v185_v0 = vld [vmem:[%s2562_s0] sm:$0xff] (!%p1935_p12)  ;;  %v187_v1 = vld [vmem:[%s2562_s0 + $0x8] sm:$0xff] (!%p1935_p12) }
  0x18   : > { %186 = vst [vmem:[#allocation2] sm:$0xff] (!%p1935_p12), %v185_v0  ;;  %188 = vst [vmem:[#allocation2 + $0x8] sm:$0xff] (!%p1935_p12), %v187_v1 }
  0x1d   : > { %196 = vsyncadd [#allocation3], 256 }
  0x1e PF: > { %s2003_s10 = sshll.u32 %s2576_s4, 4  ;;  %s200_s18 = scalar_lea.sflag [#allocation3], %s2576_s4 }
  0x1f   : > { %s2339_s11 = scalar_lea.vmem [#allocation2], %s2003_s10 }
  0x20   : > { %2207 = dma.done.wait %s200_s18, 256 }
  0x21   : > { %2208 = vsyncadd %s200_s18, 4294967040  ;;  %s205_s19 = sadd.s32 1, %s2227_s15 }
  0x22   : > { %p1938_p13 = scmp.ge.s32.totalorder %s205_s19, 2 }
  0x23   : > { %s210_s21 = ssub.s32 (!%p1938_p13), 1, %s2576_s4  ;;  %s1939_s23 = smul.u32 (!%p1938_p13), 20, %s2227_s15 }
  0x24   : > { %209 = sbr.rel (%p1938_p13) target bundleno = 44 (0x2c), region = 70  ;;  %s2004_s27 = sshll.u32 (!%p1938_p13), %s210_s21, 4 }
  0x25   : > { %s1875_s30 = scalar_lea.vmem (!%p1938_p13), %s2562_s0, %s1939_s23  ;;  %s219_s6 = scalar_lea.vmem (!%p1938_p13), [#allocation2], %s2004_s27 }
  0x26   : > { %v1942_v2 = vld [vmem:[%s1875_s30 + $0x14] sm:$0xff] (!%p1938_p13)  ;;  %v1943_v3 = vld [vmem:[%s1875_s30 + $0x1c] sm:$0xff] (!%p1938_p13)  ;;  %s220_s7 = scalar_lea.sflag (!%p1938_p13), [#allocation3], %s210_s21 }
  0x27   : > { %254 = vst [vmem:[%s219_s6] sm:$0xff] (!%p1938_p13), %v1942_v2  ;;  %256 = vst [vmem:[%s219_s6 + $0x8] sm:$0xff] (!%p1938_p13), %v1943_v3 }
  0x2b   : > { %264 = vsyncadd %s220_s7, 256 }
  0x2c PF: > { %s2237_s4 = smov 127   ;;  %v2238_v6 = vmov 0.0   ;;  %s2239_s8 = smov 126   ;;  %vm2240_vm0 = vmmov 0   ;;  %v2247_v9 = vmov 0   ;;  %v1801_v10 = vld [vmem:[%s2564_s2] sm:$0xff] }
  0x2d   : > { %362 = vmatprep.mubr.f32.mxu0 %v2238_v6  ;;  %2023 = vmatprep.subr.mxu1 %v2238_v6  ;;  %s2241_s9 = smov 110   ;;  %s2242_s10 = smov 109   ;;  %vm283_vm1 = vcmask 1039360   ;;  %vm291_vm2 = vcmask 1043456   ;;  %v1945_v16 = vld [vmem:[%s2563_s1 + $0x8] sm:$0xff]  ;;  %vm287_vm3 = vcmask 31744  }
  0x2e   : > { %2025 = vmatprep.mubr.msk.f32.mxu1 %vm2240_vm0, %v2238_v6  ;;  %s2243_s18 = smov 108   ;;  %s2244_s19 = smov 92   ;;  %2152 = vset.pattern.permute.xlu0 %v2247_v9  ;;  %vm606_vm4 = vcmask 1031168   ;;  %vm779_vm5 = vcmask 900096   ;;  %v267_v23 = vld [vmem:[%s2563_s1] sm:$0xff]  ;;  %vm952_vm6 = vcmask 891904  }
  0x2f   : > { %v2347_v4 = vld [vmem:[%s2339_s11] sm:$0xff]  ;;  %v268_v7 = vld [vmem:[%s2339_s11 + $0x8] sm:$0xff]  ;;  %s2245_s21 = smov 91   ;;  %s2246_s23 = smov 90   ;;  %v1956_v32 = vld [vmem:[%s2563_s1 + $0x10] sm:$0xff]  ;;  %vm1125_vm7 = vcmask 883712  }
  0x30   : > { %275 = vrot.lane.b32.xlu1 %v2347_v4, %s2237_s4  ;;  %v2352_v5 = vcombine.high %v2347_v4, %v2347_v4  ;;  %v274_v8 = vcombine.high %v268_v7, %v268_v7  ;;  %v266_v29 = vld [vmem:[%s2339_s11 + $0x8] sm:$0xf]  ;;  %v1962_v40 = vld [vmem:[%s2563_s1 + $0x18] sm:$0xff]  ;;  %v1968_v49 = vld [vmem:[%s2563_s1 + $0x20] sm:$0xff]  ;;  %vm1298_vm8 = vcmask 752640   ;;  %vm1471_vm9 = vcmask 744448  }
  0x31   : > { %v1974_v56 = vld [vmem:[%s2563_s1 + $0x28] sm:$0xff]  ;;  %v1980_v62 = vld [vmem:[%s2563_s1 + $0x30] sm:$0xff]  ;;  %v1986_v3 = vld [vmem:[%s2563_s1 + $0x38] sm:$0xff]  ;;  %vm1644_vm10 = vcmask 736256   ;;  %s2085_s7 = smul.u32 384, %s2227_s15  ;;  %s1830_s11 = sshll.u32 %s2330_s5, 4  ;;  %s2513_s11 = int_to_ptr.vmem [resolvable:$true] %s1830_s11 }
  0x32   : > { %277 = vrot.lane.b32.xlu0 %v2352_v5, %s2237_s4  ;;  %s2155_s15 = scalar_lea.vmem %s2513_s11, 384 }
  0x33   : > { %p2156_p0 = scmp.ne.s32.totalorder %s2513_s11, %s2155_s15 }
  0x34   : > { %600 = vrot.lane.b32.xlu1 %v2352_v5, %s2239_s8 }
  0x35   : > { %p2157_p1 = pnand %p2156_p0, %p2309_p4 }
  0x36   : > { %279 = vrot.lane.b32.xlu0 %v268_v7, %s2237_s4 }
  0x37   : > { %p2158_p2 = pneg %p2157_p1 }
  0x38   : > { %598 = vrot.lane.b32.xlu1 %v2347_v4, %s2239_s8 }
  0x3a   : > { %602 = vrot.lane.b32.xlu0 %v268_v7, %s2239_s8 }
  0x3c   : > { %775 = vrot.lane.b32.xlu1 %v268_v7, %s2241_s9 }
  0x3e   : > { %773 = vrot.lane.b32.xlu0 %v2352_v5, %s2241_s9 }
  0x40   : > { %281 = vrot.lane.b32.xlu1 %v274_v8, %s2237_s4 }
  0x42   : > { %771 = vrot.lane.b32.xlu0 %v2347_v4, %s2241_s9 }
  0x44   : > { %948 = vrot.lane.b32.xlu1 %v268_v7, %s2242_s10 }
  0x46   : > { %946 = vrot.lane.b32.xlu0 %v2352_v5, %s2242_s10 }
  0x48   : > { %604 = vrot.lane.b32.xlu1 %v274_v8, %s2239_s8 }
  0x4a   : > { %944 = vrot.lane.b32.xlu0 %v2347_v4, %s2242_s10 }
  0x4c   : > { %1121 = vrot.lane.b32.xlu1 %v268_v7, %s2243_s18 }
  0x4e   : > { %1119 = vrot.lane.b32.xlu0 %v2352_v5, %s2243_s18 }
  0x50   : > { %777 = vrot.lane.b32.xlu1 %v274_v8, %s2241_s9  ;;  %s2511_s9 = scalar_lea.hbm %s2565_s3, %s2085_s7 }
  0x52   : > { %1117 = vrot.lane.b32.xlu0 %v2347_v4, %s2243_s18 }
  0x54   : > { %1292 = vrot.lane.b32.xlu1 %v2352_v5, %s2244_s19 }
  0x56   : > { %950 = vrot.lane.b32.xlu0 %v274_v8, %s2242_s10  ;;  %s1814_s10 = scalar_lea.sflag [#allocation5], %s134_s26 }
  0x58   : > { %1290 = vrot.lane.b32.xlu1 %v2347_v4, %s2244_s19 }
  0x5a   : > { %1294 = vrot.lane.b32.xlu0 %v268_v7, %s2244_s19 }
  0x5c   : > { %1296 = vrot.lane.b32.xlu1 %v274_v8, %s2244_s19 }
  0x5e   : > { %1123 = vrot.lane.b32.xlu0 %v274_v8, %s2243_s18  ;;  %s2248_s18 = smov [#allocation4]  }
  0x5f   : > { %s2159_s19 = sshll.u32 %s2248_s18, 4  ;;  %s2160_s19 = int_to_ptr.vmem [resolvable:$false] %s2159_s19 }
  0x60   : > { %1467 = vrot.lane.b32.xlu1 %v268_v7, %s2245_s21  ;;  %p2162_p3 = scmp.lt.s32.totalorder %s2513_s11, %s2160_s19 }
  0x62   : > { %1465 = vrot.lane.b32.xlu0 %v2352_v5, %s2245_s21 }
  0x64   : > { %1469 = vrot.lane.b32.xlu1 %v274_v8, %s2245_s21 }
  0x66   : > { %1463 = vrot.lane.b32.xlu0 %v2347_v4, %s2245_s21  ;;  %s2161_s21 = scalar_lea.vmem %s2160_s19, 768 }
  0x67   : > { %p2163_p5 = scmp.lt.s32.totalorder %s2161_s21, %s2155_s15 }
  0x68   : > { %1640 = vrot.lane.b32.xlu1 %v268_v7, %s2246_s23 }
  0x69   : > { %p2164_p6 = por %p2163_p5, %p2162_p3 }
  0x6a   : > { %1638 = vrot.lane.b32.xlu0 %v2352_v5, %s2246_s23 }
  0x6b   : > { %p2165_p7 = pnand %p2164_p6, %p2158_p2 }
  0x6c   : > { %1636 = vrot.lane.b32.xlu1 %v2347_v4, %s2246_s23 }
  0x6e   : > { %1642 = vrot.lane.b32.xlu0 %v274_v8, %s2246_s23 }
  0x72   : > { %1804 = vperm.xlu0 %2152, %v1801_v10  }
  0xa2   : > { %v276_v11 = vpop.permute.xlu1 %275 }
  0xa4   : > { %v278_v12 = vpop.permute.xlu0 %277 }
  0xa5   : > { %v284_v18 = vsel %vm283_vm1, %v276_v11, %v278_v12  ;;  %v1992_v11 = vld [vmem:[%s2563_s1 + $0x40] sm:$0xff] }
  0xa6   : > { %v601_v13 = vpop.permute.xlu1 %600 }
  0xa8   : > { %v280_v14 = vpop.permute.xlu0 %279 }
  0xa9   : > { %v285_v15 = vsel %vm283_vm1, %v278_v12, %v280_v14 }
  0xaa   : > { %v599_v17 = vpop.permute.xlu1 %598  ;;  %1946 = vmatprep.subr.msk.mxu0 %vm291_vm2, %v285_v15 }
  0xab   : > { %1947 = vmatpush1.msk.msra.mxu0 %vm291_vm2, %v284_v18  ;;  %v607_v24 = vsel %vm606_vm4, %v599_v17, %v601_v13 }
  0xac   : > { %1948 = vmatmul.mubr.msk.f32.vlgmr.msra.gmra.mrb[0].mxu0 %vm287_vm3, %v1945_v16  ;;  %1951 = vmatprep.subr.msk.mxu0 %vm291_vm2, %v2352_v5  ;;  %v603_v19 = vpop.permute.xlu0 %602 }
  0xad   : > { %v608_v20 = vsel %vm606_vm4, %v601_v13, %v603_v19  ;;  %1952 = vmatpush1.msk.msra.mxu0 %vm291_vm2, %v2347_v4  ;;  %513 = vmatprep.mubr.f32.mxu0 %v2238_v6 }
  0xae   : > { %v776_v21 = vpop.permute.xlu1 %775  ;;  %1957 = vmatprep.subr.msk.mxu0 %vm291_vm2, %v608_v20 }
  0xb0   : > { %v774_v22 = vpop.permute.xlu0 %773 }
  0xb1   : > { %v781_v26 = vsel %vm779_vm5, %v774_v22, %v776_v21 }
  0xb2   : > { %v282_v25 = vpop.permute.xlu1 %281 }
  0xb3   : > { %v286_v27 = vsel %vm283_vm1, %v280_v14, %v282_v25 }
  0xb4   : > { %2024 = vmatpush3.msk.msra.mxu1 %vm291_vm2, %v286_v27  ;;  %1953 = vmatmul.mubr.msk.f32.vlgmr.msra.gmra.mrb[0].mxu0 %vm287_vm3, %v267_v23  ;;  %v772_v28 = vpop.permute.xlu0 %771 }
  0xb5   : > { %1958 = vmatpush1.msk.msra.mxu0 %vm291_vm2, %v607_v24  ;;  %2026 = vmatmul.mubr.msk.f32.vlgmr.msra.gmra.mrb[0].mxu1 %vm287_vm3, %v1945_v16  ;;  %v780_v36 = vsel %vm779_vm5, %v772_v28, %v774_v22 }
  0xb6   : > { %1963 = vmatprep.subr.msk.mxu0 %vm291_vm2, %v781_v26  ;;  %v949_v30 = vpop.permute.xlu1 %948  ;;  %2028 = vmatprep.subr.mxu1 %v2238_v6 }
  0xb7   : > { %2029 = vmatpush3.msk.msra.mxu1 %vm291_vm2, %v266_v29  ;;  %2030 = vmatprep.mubr.msk.f32.mxu1 %vm2240_vm0, %v2238_v6 }
  0xb8   : > { %v947_v31 = vpop.permute.xlu0 %946  ;;  %683 = vmatprep.mubr.f32.mxu0 %v2238_v6  ;;  %2033 = vmatprep.subr.mxu1 %v2238_v6 }
  0xb9   : > { %2031 = vmatmul.mubr.msk.f32.vlgmr.msra.gmra.mrb[2].mxu1 %vm287_vm3, %v267_v23  ;;  %v954_v34 = vsel %vm952_vm6, %v947_v31, %v949_v30 }
  0xba   : > { %v605_v33 = vpop.permute.xlu1 %604  ;;  %2035 = vmatprep.mubr.msk.f32.mxu1 %vm2240_vm0, %v2238_v6 }
  0xbb   : > { %v609_v35 = vsel %vm606_vm4, %v603_v19, %v605_v33 }
  0xbc   : > { %1959 = vmatmul.mubr.msk.f32.vlgmr.msra.gmra.mrb[0].mxu0 %vm287_vm3, %v1956_v32  ;;  %2034 = vmatpush3.msk.msra.mxu1 %vm291_vm2, %v609_v35  ;;  %v945_v37 = vpop.permute.xlu0 %944 }
  0xbd   : > { %1964 = vmatpush1.msk.msra.mxu0 %vm291_vm2, %v780_v36  ;;  %856 = vmatprep.mubr.f32.mxu0 %v2238_v6  ;;  %v953_v44 = vsel %vm952_vm6, %v945_v37, %v947_v31 }
  0xbe   : > { %1969 = vmatprep.subr.msk.mxu0 %vm291_vm2, %v954_v34  ;;  %v1122_v38 = vpop.permute.xlu1 %1121  ;;  %2038 = vmatprep.subr.mxu1 %v2238_v6 }
  0xbf   : > { %2036 = vmatmul.mubr.msk.f32.vlgmr.msra.gmra.mrb[4].mxu1 %vm287_vm3, %v1956_v32 }
  0xc0   : > { %v1120_v39 = vpop.permute.xlu0 %1119  ;;  %2040 = vmatprep.mubr.msk.f32.mxu1 %vm2240_vm0, %v2238_v6 }
  0xc1   : > { %v1127_v42 = vsel %vm1125_vm7, %v1120_v39, %v1122_v38 }
  0xc2   : > { %v778_v41 = vpop.permute.xlu1 %777 }
  0xc3   : > { %v782_v43 = vsel %vm779_vm5, %v776_v21, %v778_v41 }
  0xc4   : > { %1965 = vmatmul.mubr.msk.f32.vlgmr.msra.gmra.mrb[0].mxu0 %vm287_vm3, %v1962_v40  ;;  %2039 = vmatpush3.msk.msra.mxu1 %vm291_vm2, %v782_v43  ;;  %v1118_v45 = vpop.permute.xlu0 %1117 }
  0xc5   : > { %1970 = vmatpush1.msk.msra.mxu0 %vm291_vm2, %v953_v44  ;;  %2043 = vmatprep.subr.mxu1 %v2238_v6  ;;  %v1126_v51 = vsel %vm1125_vm7, %v1118_v45, %v1120_v39 }
  0xc6   : > { %1975 = vmatprep.subr.msk.mxu0 %vm291_vm2, %v1127_v42  ;;  %v1293_v46 = vpop.permute.xlu1 %1292  ;;  %2041 = vmatmul.mubr.msk.f32.vlgmr.msra.gmra.mrb[6].mxu1 %vm287_vm3, %v1962_v40 }
  0xc7   : > { %1029 = vmatprep.mubr.f32.mxu0 %v2238_v6  ;;  %2045 = vmatprep.mubr.msk.f32.mxu1 %vm2240_vm0, %v2238_v6 }
  0xc8   : > { %v951_v47 = vpop.permute.xlu0 %950 }
  0xc9   : > { %v955_v48 = vsel %vm952_vm6, %v949_v30, %v951_v47 }
  0xca   : > { %2044 = vmatpush3.msk.msra.mxu1 %vm291_vm2, %v955_v48  ;;  %v1291_v50 = vpop.permute.xlu1 %1290 }
  0xcb   : > { %2046 = vmatmul.mubr.msk.f32.vlgmr.msra.gmra.mrb[8].mxu1 %vm287_vm3, %v1968_v49  ;;  %2048 = vmatprep.subr.mxu1 %v2238_v6  ;;  %v1299_v59 = vsel %vm1298_vm8, %v1291_v50, %v1293_v46 }
  0xcc   : > { %1971 = vmatmul.mubr.msk.f32.vlgmr.msra.gmra.mrb[0].mxu0 %vm287_vm3, %v1968_v49  ;;  %v1295_v52 = vpop.permute.xlu0 %1294  ;;  %2050 = vmatprep.mubr.msk.f32.mxu1 %vm2240_vm0, %v2238_v6 }
  0xcd   : > { %1976 = vmatpush1.msk.msra.mxu0 %vm291_vm2, %v1126_v51  ;;  %v1300_v53 = vsel %vm1298_vm8, %v1293_v46, %v1295_v52  ;;  %1202 = vmatprep.mubr.f32.mxu0 %v2238_v6 }
  0xce   : > { %1981 = vmatprep.subr.msk.mxu0 %vm291_vm2, %v1300_v53  ;;  %v1297_v54 = vpop.permute.xlu1 %1296 }
  0xcf   : > { %v1301_v57 = vsel %vm1298_vm8, %v1295_v52, %v1297_v54 }
  0xd0   : > { %v1124_v55 = vpop.permute.xlu0 %1123 }
  0xd1   : > { %v1128_v58 = vsel %vm1125_vm7, %v1122_v38, %v1124_v55 }
  0xd2   : > { %2049 = vmatpush3.msk.msra.mxu1 %vm291_vm2, %v1128_v58  ;;  %v1468_v60 = vpop.permute.xlu1 %1467 }
  0xd3   : > { %2051 = vmatmul.mubr.msk.f32.vlgmr.msra.gmra.mrb[10].mxu1 %vm287_vm3, %v1974_v56  ;;  %2053 = vmatprep.subr.mxu1 %v2238_v6 }
  0xd4   : > { %1977 = vmatmul.mubr.msk.f32.vlgmr.msra.gmra.mrb[0].mxu0 %vm287_vm3, %v1974_v56  ;;  %2054 = vmatpush3.msk.msra.mxu1 %vm291_vm2, %v1301_v57  ;;  %v1466_v61 = vpop.permute.xlu0 %1465 }
  0xd5   : > { %1982 = vmatpush1.msk.msra.mxu0 %vm291_vm2, %v1299_v59  ;;  %v1473_v63 = vsel %vm1471_vm9, %v1466_v61, %v1468_v60  ;;  %2055 = vmatprep.mubr.msk.f32.mxu1 %vm2240_vm0, %v2238_v6 }
  0xd6   : > { %v1470_v0 = vpop.permute.xlu1 %1469  ;;  %2058 = vmatprep.subr.mxu1 %v2238_v6  ;;  %1987 = vmatprep.subr.msk.mxu0 %vm291_vm2, %v1473_v63 }
  0xd7   : > { %v1474_v1 = vsel %vm1471_vm9, %v1468_v60, %v1470_v0  ;;  %2056 = vmatmul.mubr.msk.f32.vlgmr.msra.gmra.mrb[12].mxu1 %vm287_vm3, %v1980_v62  ;;  %1375 = vmatprep.mubr.f32.mxu0 %v2238_v6 }
  0xd8   : > { %v1464_v2 = vpop.permute.xlu0 %1463  ;;  %2059 = vmatpush3.msk.msra.mxu1 %vm291_vm2, %v1474_v1  ;;  %2060 = vmatprep.mubr.msk.f32.mxu1 %vm2240_vm0, %v2238_v6 }
  0xd9   : > { %2063 = vmatprep.subr.mxu1 %v2238_v6  ;;  %v1472_v4 = vsel %vm1471_vm9, %v1464_v2, %v1466_v61 }
  0xda   : > { %v1641_v5 = vpop.permute.xlu1 %1640 }
  0xdb   : > { %2061 = vmatmul.mubr.msk.f32.vlgmr.msra.gmra.mrb[14].mxu1 %vm287_vm3, %v1986_v3 }
  0xdc   : > { %1983 = vmatmul.mubr.msk.f32.vlgmr.msra.gmra.mrb[0].mxu0 %vm287_vm3, %v1980_v62  ;;  %v1639_v7 = vpop.permute.xlu0 %1638  ;;  %2065 = vmatprep.mubr.msk.f32.mxu1 %vm2240_vm0, %v2238_v6 }
  0xdd   : > { %1988 = vmatpush1.msk.msra.mxu0 %vm291_vm2, %v1472_v4  ;;  %v1646_v8 = vsel %vm1644_vm10, %v1639_v7, %v1641_v5  ;;  %1548 = vmatprep.mubr.f32.mxu0 %v2238_v6 }
  0xde   : > { %1993 = vmatprep.subr.msk.mxu0 %vm291_vm2, %v1646_v8  ;;  %v1637_v9 = vpop.permute.xlu1 %1636 }
  0xdf   : > { %v1645_v13 = vsel %vm1644_vm10, %v1637_v9, %v1639_v7 }
  0xe0   : > { %v1643_v10 = vpop.permute.xlu0 %1642 }
  0xe1   : > { %v1647_v12 = vsel %vm1644_vm10, %v1641_v5, %v1643_v10 }
  0xe2   : > { %2064 = vmatpush3.msk.msra.mxu1 %vm291_vm2, %v1647_v12 }
  0xe3   : > { %2066 = vmatmul.mubr.msk.f32.vlgmr.msra.gmra.mrb[16].mxu1 %vm287_vm3, %v1992_v11 }
  0xe4   : > { %1989 = vmatmul.mubr.msk.f32.vlgmr.msra.gmra.mrb[0].mxu0 %vm287_vm3, %v1986_v3 }
  0xe5   : > { %1994 = vmatpush1.msk.msra.mxu0 %vm291_vm2, %v1645_v13  ;;  %1721 = vmatprep.mubr.f32.mxu0 %v2238_v6 }
  0xec   : > { %1995 = vmatmul.mubr.msk.f32.vlgmr.msra.gmra.mrb[0].mxu0 %vm287_vm3, %v1992_v11 }
  0xf1   : > { %v1805_v37 = vpop.permute.xlu0 %1804 }
 0x188   : > { %v435_v14 = vpop.f32.mrb[0].mxu1 }
 0x189   : > { %v2027_v15 = vpop.f32.mrb[1].mxu1 }
 0x18c   : > { %v586_v16 = vpop.f32.mrb[2].mxu1 }
 0x18d   : > { %v587_v17 = vadd.f32 %v586_v16, %v435_v14  ;;  %v2032_v18 = vpop.f32.mrb[3].mxu1 }
 0x192   : > { %v756_v19 = vpop.f32.mrb[4].mxu1 }
 0x193   : > { %v762_v20 = vadd.f32 %v756_v19, %v587_v17  ;;  %v2037_v21 = vpop.f32.mrb[5].mxu1 }
 0x199   : > { %v929_v22 = vpop.f32.mrb[6].mxu1 }
 0x19a   : > { %v935_v23 = vadd.f32 %v929_v22, %v762_v20  ;;  %v2042_v24 = vpop.f32.mrb[7].mxu1 }
 0x19e   : > { %v1102_v25 = vpop.f32.mrb[8].mxu1 }
 0x19f   : > { %v1108_v26 = vadd.f32 %v1102_v25, %v935_v23  ;;  %v2047_v27 = vpop.f32.mrb[9].mxu1 }
 0x1a6   : > { %v1275_v28 = vpop.f32.mrb[10].mxu1 }
 0x1a7   : > { %v1281_v6 = vadd.f32 %v1275_v28, %v1108_v26  ;;  %v2052_v29 = vpop.f32.mrb[11].mxu1 }
 0x1aa   : > { %v1448_v30 = vpop.f32.mrb[12].mxu1 }
 0x1ab   : > { %v1454_v31 = vadd.f32 %v1448_v30, %v1281_v6  ;;  %v2057_v32 = vpop.f32.mrb[13].mxu1 }
 0x1ae   : > { %v1621_v33 = vpop.f32.mrb[14].mxu1 }
 0x1af   : > { %v1627_v34 = vadd.f32 %v1621_v33, %v1454_v31  ;;  %v2062_v35 = vpop.f32.mrb[15].mxu1 }
 0x1b6   : > { %v1794_v36 = vpop.f32.mrb[16].mxu1 }
 0x1b7   : > { %v1800_v38 = vadd.f32 %v1794_v36, %v1627_v34  ;;  %v2067_v39 = vpop.f32.mrb[17].mxu1 }
 0x1b9   : > { %v1809_v40 = vadd.f32 %v1805_v37, %v1800_v38 }
 0x1bb   : > { %1812 = vst [vmem:[%s2330_s5 + $0x10] sm:$0xff] %v1809_v40 }
 0x1bf   : > { %v1723_v41 = vpop.f32.mrb[0].mxu0 }
 0x1c0   : > { %v1807_v42 = vadd.f32 %v1805_v37, %v1723_v41  ;;  %v1725_v43 = vpop.f32.mrb[1].mxu0 }
 0x1c1   : > { %v1808_v44 = vadd.f32 %v1805_v37, %v1725_v43 }
 0x1c2   : > { %1810 = vst [vmem:[%s2330_s5] sm:$0xff] %v1807_v42 }
 0x1c3   : > { %1811 = vst [vmem:[%s2330_s5 + $0x8] sm:$0xff] %v1808_v44 }
 0x1c4   : > { %2168 = shalt.err (!%p2165_p7)
}
 0x1c5   : > { %s2169_s26 = scalar_lea.hbm %s2511_s9, 384  ;;  %s2173_s27 = scalar_lea.hbm %s2565_s3, 768 }
 0x1c6   : > { %p2170_p9 = scmp.ne.s32.totalorder %s2511_s9, %s2169_s26  ;;  %p2174_p12 = scmp.lt.u32.totalorder %s2511_s9, %s2565_s3 }
 0x1c7   : > { %p2175_p13 = scmp.lt.u32.totalorder %s2173_s27, %s2169_s26  ;;  %p2177_p1 = scmp.lt.u32.totalorder %s2169_s26, %s2511_s9 }
 0x1c8   : > { %p2171_p10 = pnand %p2170_p9, %p2309_p4 }
 0x1c9   : > { %p2176_p0 = por %p2175_p13, %p2174_p12 }
 0x1ca   : > { %p2172_p11 = pneg %p2171_p10 }
 0x1cb   : > { %p2178_p2 = por %p2177_p1, %p2176_p0 }
 0x1cd   : > { %p2179_p3 = pnand %p2178_p2, %p2172_p11 }
 0x1cf   : > { %2182 = shalt.err (!%p2179_p3)
}
 0x1d0   : > { %2086 = dma.vmem_to_hbm [thread:$0]  (%p2309_p4), %s2513_s11, 384, %s2511_s9, %s1814_s10  }
 0x1d1 PF: > { %p2092_p5 = scmp.ge.s32.totalorder %s2235_s17, 2  ;;  %s1842_s30 = sand.u32 1, %s2215_s12  }
 0x1d2   : > { %s1843_s6 = scalar_lea.sflag [#allocation5], %s1842_s30 }
 0x1d3   : > { %p2089_p6 = pnand %p2092_p5, %p2316_p8 }
 0x1d5   : > { %2210 = dma.done.wait (!%p2089_p6), %s1843_s6, 384  }
 0x1d6   : > { %2212 = vsyncadd (!%p2089_p6), %s1843_s6, 4294966912  ;;  %s16_s17 = sadd.s32 1, %s2235_s17   ;;  %s2568_s12 = smov %s2219_s13 }
 0x1d7   : > { %p13_p7 = scmp.ge.s32.totalorder %s16_s17, 4   ;;  %s2569_s13 = smov %s2223_s14 }
 0x1d8   : > { %s2570_s14 = smov %s2322_s25  ;;  %s2571_s15 = smov %s2231_s16 }
 0x1d9   : > { %s2572_s16 = smov %s2574_s20  ;;  %15 = sbr.rel (!%p13_p7) target bundleno = 4 (0x4), region = 167 }
 0x1e0   :  { %1848 = vsyncpa [#allocation5], 1 }
 0x1e1   :  { %1850 = vsyncpa [#allocation5 + $0x1], 1 }
 0x1e2   :  { %1851 = vsyncmov [#allocation3] }
 0x1e5   :  { %s1852_s22 = vpop.sfrf %1851 }
 0x1e6   :  { %p2001_p4 = scmp.ne.s32.totalorder %s1852_s22, 0 }
 0x1e8   :  { %1856 = shalt.err (%p2001_p4)  }
 0x1e9   :  { %1858 = vsyncmov [#allocation3 + $0x1] }
 0x1ec   :  { %s1859_s24 = vpop.sfrf %1858 }
 0x1ed   :  { %p2002_p8 = scmp.ne.s32.totalorder %s1859_s24, 0 }
 0x1ef   :  { %1863 = shalt.err (%p2002_p8)  }

</bundles_post_ra>
